<compile_context>
chip_gen: v7x
topology: tpu7x:2x2x1
jax: 0.10.0
libtpu: 0.0.40
codegen_flags: <defaults>
</compile_context>

<pallas_src>
import jax
import jax.numpy as jnp
from jax.experimental import pallas as pl
from jax.experimental.pallas import tpu as pltpu

# ------------------ config (mirrors cfg.ae.*) ------------------
B = 2            # batch
N = 64           # points per part
L = 4            # latent tokens (PN2 centers)
G = N // L       # points per group
C = 32           # encoder feature dim (must be divisible by 4)
H = 32           # hidden width of point MLPs
N_EMBED = 128    # cfg.ae.n_embeddings
E_DIM = C // 4   # cfg.ae.embedding_dim
BETA = 0.25      # cfg.ae.beta
BL = B * L       # latent tokens across the whole batch
NSUB = C // E_DIM            # 4 sub-vectors per token
OUT_LANES = 128              # packed output slab width
_XHAT_OFF = C                # x_hat lane offset in the output slab
_LOSS_OFF = C + G * 3        # loss lane
_PERP_OFF = _LOSS_OFF + 1    # perplexity lane
_PAD = OUT_LANES - (_PERP_OFF + 1)

# slab row layout for the "P" parameter slab (16, 128)
_ROW_CBT0 = 0      # rows 0:8  -> codebook^T (E_DIM, N_EMBED)
_ROW_W1 = 8        # rows 8:11 -> w1 (3, H) in lanes 0:H
_ROW_B = 11        # row 11    -> b1 | b2 | b3 in lanes 0:3H
_ROW_B4 = 12       # row 12    -> b4 in lanes 0:G*3


# ------------------ fused encoder + VQ + decoder kernel ------------------
def _vqvae_fused_kernel(xloc_ref, w_ref, p_ref, cb_ref, out_ref):
    f32 = jnp.float32

    # ---- unpack parameter slabs (static VMEM slices) ----
    w1 = p_ref[_ROW_W1:_ROW_W1 + 3, 0:H]            # (3, H)
    b1 = p_ref[_ROW_B:_ROW_B + 1, 0:H]              # (1, H)
    b2 = p_ref[_ROW_B:_ROW_B + 1, H:2 * H]          # (1, C)
    b3 = p_ref[_ROW_B:_ROW_B + 1, 2 * H:3 * H]      # (1, H)
    b4 = p_ref[_ROW_B4:_ROW_B4 + 1, 0:G * 3]        # (1, G*3)
    cb_t = p_ref[0:E_DIM, :]                        # (E_DIM, N_EMBED) = (8, 128)
    w2 = w_ref[:, 0:C]                              # (H, C)
    w3 = w_ref[:, C:C + H]                          # (C, H)
    w4 = w_ref[:, C + H:C + H + G * 3]              # (H, G*3)
    cb = cb_ref[...]                                # (N_EMBED, E_DIM) = (128, 8)

    # ---------------- encoder (PN2.encode stand-in) ----------------
    # local (pre-centered) coords, flattened wrapper-side: (BL*G, 3)
    x = xloc_ref[...]                                # (128, 3)
    # degenerate K=3 contraction as a VPU FMA chain (keeps the MXU free)
    h = (x[:, 0:1] * w1[0:1, :]
         + x[:, 1:2] * w1[1:2, :]
         + x[:, 2:3] * w1[2:3, :]
         + b1)                                       # (128, H)
    h = jnp.maximum(h, 0.0)
    f = jnp.dot(h, w2, preferred_element_type=f32) + b2
    f = jnp.maximum(f, 0.0).reshape(BL, G, C)        # (BL, G, C)
    z_e = jnp.max(f, axis=1)                         # (BL, C)

    # ---------------- vector quantizer (batched) -------------------
    # z_e.reshape(B, 4L, E_DIM): every row of z_e splits into 4 sub-vectors.
    # Batch all B*4L = 32 sub-vectors into one (32, 8) matrix -> ONE distance
    # matmul, ONE argmin, ONE codebook gather.
    z_flat = jnp.concatenate(
        [z_e[:, j * E_DIM:(j + 1) * E_DIM] for j in range(NSUB)], axis=0)  # (32, 8)

    cb_sq = jnp.sum(cb_t * cb_t, axis=0, keepdims=True)                    # (1, 128)
    dots = jnp.dot(z_flat, cb_t, preferred_element_type=f32)               # (32, 128)
    # ||z||^2 is constant across the codebook axis -> omit (argmin unchanged)
    d = cb_sq - 2.0 * dots                                                 # (32, 128)

    col = jax.lax.broadcasted_iota(jnp.int32, (NSUB * BL, N_EMBED), 1)
    d_min = jnp.min(d, axis=1, keepdims=True)                              # (32, 1)
    idx = jnp.min(jnp.where(d <= d_min, col, N_EMBED), axis=1, keepdims=True)
    idx = jnp.minimum(idx, N_EMBED - 1)            # guarantee a valid index
    onehot = (col == idx).astype(f32)                                      # (32, 128)
    zq_flat = jnp.dot(onehot, cb, preferred_element_type=f32)              # (32, 8)

    # forward value of mean((zq.detach()-z)^2) + beta*mean((zq-z.detach())^2)
    diff = zq_flat - z_flat
    loss11 = (1.0 + BETA) * jnp.sum(diff * diff, keepdims=True) / float(BL * C)

    cnt = jnp.sum(onehot, axis=0, keepdims=True)                           # (1, 128)
    e_mean = cnt / float(B * 4 * L)
    perp11 = jnp.exp(-jnp.sum(e_mean * jnp.log(e_mean + 1e-10),
                              axis=1, keepdims=True))                      # (1, 1)

    # reassemble z_q (BL, C) from the 4 sublane blocks (forward value of the
    # straight-through estimator is just z_q)
    z_q = jnp.concatenate(
        [zq_flat[j * BL:(j + 1) * BL, :] for j in range(NSUB)], axis=1)    # (BL, C)

    # ---------------- decoder (PN2.decode stand-in) -----------------
    h2 = jnp.maximum(jnp.dot(z_q, w3, preferred_element_type=f32) + b3, 0.0)
    xhat = jnp.dot(h2, w4, preferred_element_type=f32) + b4                # (BL, G*3)

    # ---------------- single lane-dense packed output ----------------
    out_ref[...] = jnp.concatenate(
        [z_q,
         xhat,
         jnp.broadcast_to(loss11, (BL, 1)),
         jnp.broadcast_to(perp11, (BL, 1)),
         jnp.zeros((BL, _PAD), f32)], axis=1)                              # (8, 128)


_VMEM_SPEC = pl.BlockSpec(memory_space=pltpu.MemorySpace.VMEM)

_COST = pl.CostEstimate(
    flops=460_000,            # enc matmul + FMA chain + 2 VQ matmuls + decoder
    transcendentals=256,      # exp + log over the (1,128) histogram
    bytes_accessed=36_864,    # ~1.5K pts + 16K W + 8K P + 4K cb + 4K out
)


# ------------------ VQVAE.forward ------------------
@jax.jit
def vqvae_forward(part_pcs, packed):
    # data_dict['part_pcs'] : (B, N, 3)   (PyTorch permute to (B,3,N) folded away)
    pts = part_pcs.reshape(BL, G, 3)
    center = jnp.mean(pts, axis=1)                         # (BL, 3) -> xyz output
    xloc = (pts - center[:, None, :]).reshape(BL * G, 3)   # (128, 3), contiguous

    out = pl.pallas_call(
        _vqvae_fused_kernel,
        in_specs=[_VMEM_SPEC] * 4,
        out_specs=_VMEM_SPEC,
        out_shape=jax.ShapeDtypeStruct((BL, OUT_LANES), jnp.float32),
        cost_estimate=_COST,
    )(xloc, packed['W'], packed['P'], packed['cb'])

    z_q = out[:, 0:C]
    x_hat = out[:, _XHAT_OFF:_XHAT_OFF + G * 3]
    return {
        'embedding_loss': out[0, _LOSS_OFF],
        'pc_offset': x_hat.reshape(B, L, G, 3),
        'perplexity': out[0, _PERP_OFF],
        'xyz': center.reshape(B, L, 3),
        'z_q': z_q.reshape(B, L, C),
    }


def pack_params(params):
    """Pre-pack the 9 small parameter arrays into 3 lane-dense slabs (done once)."""
    f32 = jnp.float32
    # (32, 128) weight slab: [ w2 | w3 | w4 | pad ]
    W = jnp.zeros((H, 128), f32)
    W = W.at[:, 0:C].set(params['w2'])
    W = W.at[:, C:C + H].set(params['w3'])
    W = W.at[:, C + H:C + H + G * 3].set(params['w4'])
    # (16, 128) misc slab: [ cb^T ; w1 ; b1|b2|b3 ; b4 ; pad ]
    P = jnp.zeros((16, 128), f32)
    cb = params['codebook']                               # (N_EMBED, E_DIM)
    P = P.at[0:E_DIM, :].set(cb.T)
    P = P.at[_ROW_W1:_ROW_W1 + 3, 0:H].set(params['w1'])
    P = P.at[_ROW_B, 0:H].set(params['b1'][0])
    P = P.at[_ROW_B, H:2 * H].set(params['b2'][0])
    P = P.at[_ROW_B, 2 * H:3 * H].set(params['b3'][0])
    P = P.at[_ROW_B4, 0:G * 3].set(params['b4'][0])
    return {'W': W, 'P': P, 'cb': cb}


def init_params(key):
    ks = jax.random.split(key, 6)
    params = {
        'w1': 0.1 * jax.random.normal(ks[0], (3, H), jnp.float32),
        'b1': jnp.zeros((1, H), jnp.float32),
        'w2': 0.1 * jax.random.normal(ks[1], (H, C), jnp.float32),
        'b2': jnp.zeros((1, C), jnp.float32),
        'w3': 0.1 * jax.random.normal(ks[2], (C, H), jnp.float32),
        'b3': jnp.zeros((1, H), jnp.float32),
        'w4': 0.1 * jax.random.normal(ks[3], (H, G * 3), jnp.float32),
        'b4': jnp.zeros((1, G * 3), jnp.float32),
        # nn.Embedding(n_e, e_dim).weight.uniform_(-1/n_e, 1/n_e)
        'codebook': jax.random.uniform(
            ks[4], (N_EMBED, E_DIM), jnp.float32, -1.0 / N_EMBED, 1.0 / N_EMBED),
    }
    return params


if __name__ == "__main__":
    key = jax.random.PRNGKey(0)
    k_data, k_param = jax.random.split(key)
    part_pcs = jax.random.normal(k_data, (B, N, 3), jnp.float32)
    params = init_params(k_param)
    packed = pack_params(params)

    out = vqvae_forward(part_pcs, packed)
    jax.block_until_ready(out)

    assert out['pc_offset'].shape == (B, L, G, 3)
    assert out['z_q'].shape == (B, L, C)
    assert out['xyz'].shape == (B, L, 3)
    assert out['embedding_loss'].shape == ()
    assert out['perplexity'].shape == ()
    print("KERNEL_OK")
</pallas_src>

<mosaic_0001>
module attributes {stable_mosaic.version = 11 : i64} {
  func.func @_vqvae_fused_kernel(%arg0: memref<128x3xf32, #tpu.memory_space<vmem>>, %arg1: memref<32x128xf32, #tpu.memory_space<vmem>>, %arg2: memref<16x128xf32, #tpu.memory_space<vmem>>, %arg3: memref<128x8xf32, #tpu.memory_space<vmem>>, %arg4: memref<8x128xf32, #tpu.memory_space<vmem>>) attributes {dimension_semantics = [], scalar_prefetch = 0 : i64, scratch_operands = 0 : i64, tpu.core_type = #tpu.core_type<tc>} {
    %c8 = arith.constant 8 : index
    %c0 = arith.constant 0 : index
    %0 = vector.load %arg2[%c8, %c0] : memref<16x128xf32, #tpu.memory_space<vmem>>, vector<3x32xf32>
    %c11 = arith.constant 11 : index
    %c0_0 = arith.constant 0 : index
    %1 = vector.load %arg2[%c11, %c0_0] : memref<16x128xf32, #tpu.memory_space<vmem>>, vector<1x32xf32>
    %c11_1 = arith.constant 11 : index
    %c32 = arith.constant 32 : index
    %2 = vector.load %arg2[%c11_1, %c32] : memref<16x128xf32, #tpu.memory_space<vmem>>, vector<1x32xf32>
    %c11_2 = arith.constant 11 : index
    %c64 = arith.constant 64 : index
    %3 = vector.load %arg2[%c11_2, %c64] : memref<16x128xf32, #tpu.memory_space<vmem>>, vector<1x32xf32>
    %c12 = arith.constant 12 : index
    %c0_3 = arith.constant 0 : index
    %4 = vector.load %arg2[%c12, %c0_3] : memref<16x128xf32, #tpu.memory_space<vmem>>, vector<1x48xf32>
    %c0_4 = arith.constant 0 : index
    %c0_5 = arith.constant 0 : index
    %5 = vector.load %arg2[%c0_4, %c0_5] : memref<16x128xf32, #tpu.memory_space<vmem>>, vector<8x128xf32>
    %c0_6 = arith.constant 0 : index
    %c0_7 = arith.constant 0 : index
    %6 = vector.load %arg1[%c0_6, %c0_7] : memref<32x128xf32, #tpu.memory_space<vmem>>, vector<32x32xf32>
    %c0_8 = arith.constant 0 : index
    %c32_9 = arith.constant 32 : index
    %7 = vector.load %arg1[%c0_8, %c32_9] : memref<32x128xf32, #tpu.memory_space<vmem>>, vector<32x32xf32>
    %c0_10 = arith.constant 0 : index
    %c64_11 = arith.constant 64 : index
    %8 = vector.load %arg1[%c0_10, %c64_11] : memref<32x128xf32, #tpu.memory_space<vmem>>, vector<32x48xf32>
    %c0_12 = arith.constant 0 : index
    %c0_13 = arith.constant 0 : index
    %9 = vector.load %arg3[%c0_12, %c0_13] : memref<128x8xf32, #tpu.memory_space<vmem>>, vector<128x8xf32>
    %c0_14 = arith.constant 0 : index
    %c0_15 = arith.constant 0 : index
    %10 = vector.load %arg0[%c0_14, %c0_15] : memref<128x3xf32, #tpu.memory_space<vmem>>, vector<128x3xf32>
    %11 = vector.extract_strided_slice %10 {offsets = [0, 0], sizes = [128, 1], strides = [1, 1]} : vector<128x3xf32> to vector<128x1xf32>
    %12 = vector.extract_strided_slice %0 {offsets = [0, 0], sizes = [1, 32], strides = [1, 1]} : vector<3x32xf32> to vector<1x32xf32>
    %13 = vector.broadcast %11 : vector<128x1xf32> to vector<128x32xf32>
    %14 = vector.broadcast %12 : vector<1x32xf32> to vector<128x32xf32>
    %15 = arith.mulf %13, %14 : vector<128x32xf32>
    %16 = vector.extract_strided_slice %10 {offsets = [0, 1], sizes = [128, 1], strides = [1, 1]} : vector<128x3xf32> to vector<128x1xf32>
    %17 = vector.extract_strided_slice %0 {offsets = [1, 0], sizes = [1, 32], strides = [1, 1]} : vector<3x32xf32> to vector<1x32xf32>
    %18 = vector.broadcast %16 : vector<128x1xf32> to vector<128x32xf32>
    %19 = vector.broadcast %17 : vector<1x32xf32> to vector<128x32xf32>
    %20 = arith.mulf %18, %19 : vector<128x32xf32>
    %21 = arith.addf %15, %20 : vector<128x32xf32>
    %22 = vector.extract_strided_slice %10 {offsets = [0, 2], sizes = [128, 1], strides = [1, 1]} : vector<128x3xf32> to vector<128x1xf32>
    %23 = vector.extract_strided_slice %0 {offsets = [2, 0], sizes = [1, 32], strides = [1, 1]} : vector<3x32xf32> to vector<1x32xf32>
    %24 = vector.broadcast %22 : vector<128x1xf32> to vector<128x32xf32>
    %25 = vector.broadcast %23 : vector<1x32xf32> to vector<128x32xf32>
    %26 = arith.mulf %24, %25 : vector<128x32xf32>
    %27 = arith.addf %21, %26 : vector<128x32xf32>
    %28 = vector.broadcast %1 : vector<1x32xf32> to vector<128x32xf32>
    %29 = arith.addf %27, %28 : vector<128x32xf32>
    %cst = arith.constant 0.000000e+00 : f32
    %30 = vector.broadcast %cst : f32 to vector<128x32xf32>
    %31 = arith.maximumf %29, %30 : vector<128x32xf32>
    %cst_16 = arith.constant dense<0.000000e+00> : vector<128x32xf32>
    %32 = tpu.matmul %31, %6, %cst_16 {dimension_numbers = #tpu.dot_dimension_numbers<[1], [0], [0], [1], [0, 0, 1, 1], [], []>} : vector<128x32xf32>, vector<32x32xf32>, vector<128x32xf32> -> vector<128x32xf32>
    %33 = vector.broadcast %2 : vector<1x32xf32> to vector<128x32xf32>
    %34 = arith.addf %32, %33 : vector<128x32xf32>
    %cst_17 = arith.constant 0.000000e+00 : f32
    %35 = vector.broadcast %cst_17 : f32 to vector<128x32xf32>
    %36 = arith.maximumf %34, %35 : vector<128x32xf32>
    %37 = vector.shape_cast %36 : vector<128x32xf32> to vector<8x16x32xf32>
    %cst_18 = arith.constant dense<0xFF800000> : vector<8x32xf32>
    %38 = vector.multi_reduction <maximumf>, %37, %cst_18 [1] : vector<8x16x32xf32> to vector<8x32xf32>
    %39 = vector.extract_strided_slice %38 {offsets = [0, 0], sizes = [8, 8], strides = [1, 1]} : vector<8x32xf32> to vector<8x8xf32>
    %40 = vector.extract_strided_slice %38 {offsets = [0, 8], sizes = [8, 8], strides = [1, 1]} : vector<8x32xf32> to vector<8x8xf32>
    %41 = vector.extract_strided_slice %38 {offsets = [0, 16], sizes = [8, 8], strides = [1, 1]} : vector<8x32xf32> to vector<8x8xf32>
    %42 = vector.extract_strided_slice %38 {offsets = [0, 24], sizes = [8, 8], strides = [1, 1]} : vector<8x32xf32> to vector<8x8xf32>
    %43 = tpu.concatenate %39, %40, %41, %42 in 0 : vector<8x8xf32>, vector<8x8xf32>, vector<8x8xf32>, vector<8x8xf32> -> vector<32x8xf32>
    %44 = arith.mulf %5, %5 : vector<8x128xf32>
    %cst_19 = arith.constant dense<0.000000e+00> : vector<128xf32>
    %45 = vector.multi_reduction <add>, %44, %cst_19 [0] : vector<8x128xf32> to vector<128xf32>
    %46 = vector.shape_cast %45 : vector<128xf32> to vector<1x128xf32>
    %cst_20 = arith.constant dense<0.000000e+00> : vector<32x128xf32>
    %47 = tpu.matmul %43, %5, %cst_20 {dimension_numbers = #tpu.dot_dimension_numbers<[1], [0], [0], [1], [0, 0, 1, 1], [], []>} : vector<32x8xf32>, vector<8x128xf32>, vector<32x128xf32> -> vector<32x128xf32>
    %cst_21 = arith.constant 2.000000e+00 : f32
    %48 = vector.broadcast %cst_21 : f32 to vector<32x128xf32>
    %49 = arith.mulf %48, %47 : vector<32x128xf32>
    %50 = vector.broadcast %46 : vector<1x128xf32> to vector<32x128xf32>
    %51 = arith.subf %50, %49 : vector<32x128xf32>
    %52 = tpu.iota {dimensions = array<i32: 1>} : vector<32x128xi32>
    %cst_22 = arith.constant dense<0x7F800000> : vector<32xf32>
    %53 = vector.multi_reduction <minimumf>, %51, %cst_22 [1] : vector<32x128xf32> to vector<32xf32>
    %54 = vector.shape_cast %53 : vector<32xf32> to vector<32x1xf32>
    %55 = vector.broadcast %54 : vector<32x1xf32> to vector<32x128xf32>
    %56 = arith.cmpf ole, %51, %55 : vector<32x128xf32>
    %c128_i32 = arith.constant 128 : i32
    %57 = vector.broadcast %c128_i32 : i32 to vector<32x128xi32>
    %58 = arith.select %56, %52, %57 : vector<32x128xi1>, vector<32x128xi32>
    %cst_23 = arith.constant dense<2147483647> : vector<32xi32>
    %59 = vector.multi_reduction <minsi>, %58, %cst_23 [1] : vector<32x128xi32> to vector<32xi32>
    %60 = vector.shape_cast %59 : vector<32xi32> to vector<32x1xi32>
    %c127_i32 = arith.constant 127 : i32
    %61 = vector.broadcast %c127_i32 : i32 to vector<32x1xi32>
    %62 = arith.minsi %60, %61 : vector<32x1xi32>
    %63 = vector.broadcast %62 : vector<32x1xi32> to vector<32x128xi32>
    %64 = arith.cmpi eq, %52, %63 : vector<32x128xi32>
    %65 = arith.extui %64 : vector<32x128xi1> to vector<32x128xi32>
    %66 = arith.sitofp %65 : vector<32x128xi32> to vector<32x128xf32>
    %cst_24 = arith.constant dense<0.000000e+00> : vector<32x8xf32>
    %67 = tpu.matmul %66, %9, %cst_24 {dimension_numbers = #tpu.dot_dimension_numbers<[1], [0], [0], [1], [0, 0, 1, 1], [], []>} : vector<32x128xf32>, vector<128x8xf32>, vector<32x8xf32> -> vector<32x8xf32>
    %68 = arith.subf %67, %43 : vector<32x8xf32>
    %69 = arith.mulf %68, %68 : vector<32x8xf32>
    %70 = vector.shape_cast %69 : vector<32x8xf32> to vector<1x32x8xf32>
    %cst_25 = arith.constant dense<0.000000e+00> : vector<1xf32>
    %71 = vector.multi_reduction <add>, %70, %cst_25 [1, 2] : vector<1x32x8xf32> to vector<1xf32>
    %72 = vector.shape_cast %71 : vector<1xf32> to vector<1x1x1xf32>
    %73 = vector.extract %72[0, 0, 0] : f32 from vector<1x1x1xf32>
    %74 = vector.broadcast %73 : f32 to vector<1x1xf32>
    %cst_26 = arith.constant 1.250000e+00 : f32
    %75 = vector.broadcast %cst_26 : f32 to vector<1x1xf32>
    %76 = arith.mulf %75, %74 : vector<1x1xf32>
    %cst_27 = arith.constant 2.560000e+02 : f32
    %77 = vector.broadcast %cst_27 : f32 to vector<1x1xf32>
    %78 = arith.divf %76, %77 : vector<1x1xf32>
    %cst_28 = arith.constant dense<0.000000e+00> : vector<128xf32>
    %79 = vector.multi_reduction <add>, %66, %cst_28 [0] : vector<32x128xf32> to vector<128xf32>
    %80 = vector.shape_cast %79 : vector<128xf32> to vector<1x128xf32>
    %cst_29 = arith.constant 3.200000e+01 : f32
    %81 = vector.broadcast %cst_29 : f32 to vector<1x128xf32>
    %82 = arith.divf %80, %81 : vector<1x128xf32>
    %cst_30 = arith.constant 1.000000e-10 : f32
    %83 = vector.broadcast %cst_30 : f32 to vector<1x128xf32>
    %84 = arith.addf %82, %83 : vector<1x128xf32>
    %85 = math.log %84 : vector<1x128xf32>
    %86 = arith.mulf %82, %85 : vector<1x128xf32>
    %cst_31 = arith.constant dense<0.000000e+00> : vector<1xf32>
    %87 = vector.multi_reduction <add>, %86, %cst_31 [1] : vector<1x128xf32> to vector<1xf32>
    %88 = vector.shape_cast %87 : vector<1xf32> to vector<1x1xf32>
    %cst_32 = arith.constant 0.000000e+00 : f32
    %89 = vector.broadcast %cst_32 : f32 to vector<1x1xf32>
    %90 = arith.subf %89, %88 : vector<1x1xf32>
    %91 = math.exp %90 : vector<1x1xf32>
    %92 = vector.extract_strided_slice %67 {offsets = [0, 0], sizes = [8, 8], strides = [1, 1]} : vector<32x8xf32> to vector<8x8xf32>
    %93 = vector.extract_strided_slice %67 {offsets = [8, 0], sizes = [8, 8], strides = [1, 1]} : vector<32x8xf32> to vector<8x8xf32>
    %94 = vector.extract_strided_slice %67 {offsets = [16, 0], sizes = [8, 8], strides = [1, 1]} : vector<32x8xf32> to vector<8x8xf32>
    %95 = vector.extract_strided_slice %67 {offsets = [24, 0], sizes = [8, 8], strides = [1, 1]} : vector<32x8xf32> to vector<8x8xf32>
    %96 = tpu.concatenate %92, %93, %94, %95 in 1 : vector<8x8xf32>, vector<8x8xf32>, vector<8x8xf32>, vector<8x8xf32> -> vector<8x32xf32>
    %cst_33 = arith.constant dense<0.000000e+00> : vector<8x32xf32>
    %97 = tpu.matmul %96, %7, %cst_33 {dimension_numbers = #tpu.dot_dimension_numbers<[1], [0], [0], [1], [0, 0, 1, 1], [], []>} : vector<8x32xf32>, vector<32x32xf32>, vector<8x32xf32> -> vector<8x32xf32>
    %98 = vector.broadcast %3 : vector<1x32xf32> to vector<8x32xf32>
    %99 = arith.addf %97, %98 : vector<8x32xf32>
    %cst_34 = arith.constant 0.000000e+00 : f32
    %100 = vector.broadcast %cst_34 : f32 to vector<8x32xf32>
    %101 = arith.maximumf %99, %100 : vector<8x32xf32>
    %cst_35 = arith.constant dense<0.000000e+00> : vector<8x48xf32>
    %102 = tpu.matmul %101, %8, %cst_35 {dimension_numbers = #tpu.dot_dimension_numbers<[1], [0], [0], [1], [0, 0, 1, 1], [], []>} : vector<8x32xf32>, vector<32x48xf32>, vector<8x48xf32> -> vector<8x48xf32>
    %103 = vector.broadcast %4 : vector<1x48xf32> to vector<8x48xf32>
    %104 = arith.addf %102, %103 : vector<8x48xf32>
    %105 = vector.shape_cast %78 : vector<1x1xf32> to vector<1x1xf32>
    %106 = vector.broadcast %105 : vector<1x1xf32> to vector<8x1xf32>
    %107 = vector.shape_cast %91 : vector<1x1xf32> to vector<1x1xf32>
    %108 = vector.broadcast %107 : vector<1x1xf32> to vector<8x1xf32>
    %cst_36 = arith.constant 0.000000e+00 : f32
    %109 = vector.broadcast %cst_36 : f32 to vector<8x46xf32>
    %110 = tpu.concatenate %96, %104, %106, %108, %109 in 1 : vector<8x32xf32>, vector<8x48xf32>, vector<8x1xf32>, vector<8x1xf32>, vector<8x46xf32> -> vector<8x128xf32>
    %c0_37 = arith.constant 0 : index
    %c0_38 = arith.constant 0 : index
    %111 = vector.load %arg4[%c0_37, %c0_38] : memref<8x128xf32, #tpu.memory_space<vmem>>, vector<8x128xf32>
    tpu.vector_store %arg4[%c0_37, %c0_38], %110 {strides = array<i32>} : memref<8x128xf32, #tpu.memory_space<vmem>>, vector<8x128xf32>,
    return
  }
}

</mosaic_0001>

<bundles_post_ra>
// kernel: sub.0
= control target key start
LH: loop header
LB: loop body
LE: loop exit
PB: predicated region body
PF: predicated region fallthrough
CT: control target
= control target key end

     0   :  { %s364_s0 = inlined_call_operand.vmem [shape: f32[128,3], index: 0, kind: input, shape index: {}]   ;;  %s365_s1 = inlined_call_operand.vmem [shape: f32[128,3], index: 1, kind: input, shape index: {}]   ;;  %s366_s2 = inlined_call_operand.vmem [shape: f32[128,3], index: 2, kind: output, shape index: {}]  }
   0x1   :  { %v3_v0 = vld [vmem:[%s364_s0] sm:$0xff]  ;;  %v160_v2 = vld [vmem:[%s364_s0 + $0x8] sm:$0xff]  ;;  %v163_v5 = vld [vmem:[%s364_s0 + $0x10] sm:$0xff] }
   0x2   :  { %v4_v1 = vld [vmem:[%s365_s1] sm:$0xff]  ;;  %v161_v4 = vld [vmem:[%s365_s1 + $0x8] sm:$0xff]  ;;  %v164_v6 = vld [vmem:[%s365_s1 + $0x10] sm:$0xff] }
   0x3   :  { %v7_v3 = vsub.f32 %v3_v0, %v4_v1  ;;  %v16_v7 = vsub.f32 %v160_v2, %v161_v4  ;;  %v26_v8 = vsub.f32 %v163_v5, %v164_v6  ;;  %v166_v9 = vld [vmem:[%s364_s0 + $0x18] sm:$0xff]  ;;  %v169_v11 = vld [vmem:[%s364_s0 + $0x20] sm:$0xff]  ;;  %v172_v14 = vld [vmem:[%s364_s0 + $0x28] sm:$0xff] }
   0x4   :  { %v167_v10 = vld [vmem:[%s365_s1 + $0x18] sm:$0xff]  ;;  %v170_v13 = vld [vmem:[%s365_s1 + $0x20] sm:$0xff]  ;;  %v173_v15 = vld [vmem:[%s365_s1 + $0x28] sm:$0xff] }
   0x5   :  { %9 = vst [vmem:[%s366_s2] sm:$0xff] %v7_v3  ;;  %v36_v12 = vsub.f32 %v166_v9, %v167_v10  ;;  %162 = vst [vmem:[%s366_s2 + $0x8] sm:$0xff] %v16_v7  ;;  %v46_v16 = vsub.f32 %v169_v11, %v170_v13  ;;  %v56_v17 = vsub.f32 %v172_v14, %v173_v15  ;;  %v175_v18 = vld [vmem:[%s364_s0 + $0x30] sm:$0xff]  ;;  %v178_v20 = vld [vmem:[%s364_s0 + $0x38] sm:$0xff] }
   0x6   :  { %165 = vst [vmem:[%s366_s2 + $0x10] sm:$0xff] %v26_v8  ;;  %v176_v19 = vld [vmem:[%s365_s1 + $0x30] sm:$0xff]  ;;  %v179_v22 = vld [vmem:[%s365_s1 + $0x38] sm:$0xff]  ;;  %v181_v23 = vld [vmem:[%s364_s0 + $0x40] sm:$0xff] }
   0x7   :  { %168 = vst [vmem:[%s366_s2 + $0x18] sm:$0xff] %v36_v12  ;;  %v66_v21 = vsub.f32 %v175_v18, %v176_v19  ;;  %v182_v24 = vld [vmem:[%s365_s1 + $0x40] sm:$0xff]  ;;  %171 = vst [vmem:[%s366_s2 + $0x20] sm:$0xff] %v46_v16  ;;  %v76_v25 = vsub.f32 %v178_v20, %v179_v22  ;;  %v184_v27 = vld [vmem:[%s364_s0 + $0x48] sm:$0xff] }
   0x8   :  { %174 = vst [vmem:[%s366_s2 + $0x28] sm:$0xff] %v56_v17  ;;  %v86_v26 = vsub.f32 %v181_v23, %v182_v24  ;;  %v185_v28 = vld [vmem:[%s365_s1 + $0x48] sm:$0xff]  ;;  %v187_v29 = vld [vmem:[%s364_s0 + $0x50] sm:$0xff]  ;;  %v190_v32 = vld [vmem:[%s364_s0 + $0x58] sm:$0xff] }
   0x9   :  { %177 = vst [vmem:[%s366_s2 + $0x30] sm:$0xff] %v66_v21  ;;  %v96_v30 = vsub.f32 %v184_v27, %v185_v28  ;;  %v188_v31 = vld [vmem:[%s365_s1 + $0x50] sm:$0xff]  ;;  %v191_v33 = vld [vmem:[%s365_s1 + $0x58] sm:$0xff]  ;;  %180 = vst [vmem:[%s366_s2 + $0x38] sm:$0xff] %v76_v25 }
   0xa   :  { %183 = vst [vmem:[%s366_s2 + $0x40] sm:$0xff] %v86_v26  ;;  %v106_v34 = vsub.f32 %v187_v29, %v188_v31  ;;  %v116_v35 = vsub.f32 %v190_v32, %v191_v33  ;;  %v193_v36 = vld [vmem:[%s364_s0 + $0x60] sm:$0xff]  ;;  %v196_v38 = vld [vmem:[%s364_s0 + $0x68] sm:$0xff]  ;;  %v199_v41 = vld [vmem:[%s364_s0 + $0x70] sm:$0xff] }
   0xb   :  { %v194_v37 = vld [vmem:[%s365_s1 + $0x60] sm:$0xff]  ;;  %186 = vst [vmem:[%s366_s2 + $0x48] sm:$0xff] %v96_v30  ;;  %v197_v40 = vld [vmem:[%s365_s1 + $0x68] sm:$0xff]  ;;  %v200_v42 = vld [vmem:[%s365_s1 + $0x70] sm:$0xff] }
   0xc   :  { %v126_v39 = vsub.f32 %v193_v36, %v194_v37  ;;  %189 = vst [vmem:[%s366_s2 + $0x50] sm:$0xff] %v106_v34  ;;  %192 = vst [vmem:[%s366_s2 + $0x58] sm:$0xff] %v116_v35  ;;  %v136_v43 = vsub.f32 %v196_v38, %v197_v40  ;;  %v146_v44 = vsub.f32 %v199_v41, %v200_v42  ;;  %v202_v45 = vld [vmem:[%s364_s0 + $0x78] sm:$0xff] }
   0xd   :  { %v203_v46 = vld [vmem:[%s365_s1 + $0x78] sm:$0xff] }
   0xe   :  { %195 = vst [vmem:[%s366_s2 + $0x60] sm:$0xff] %v126_v39  ;;  %v156_v47 = vsub.f32 %v202_v45, %v203_v46  ;;  %198 = vst [vmem:[%s366_s2 + $0x68] sm:$0xff] %v136_v43 }
   0xf   :  { %201 = vst [vmem:[%s366_s2 + $0x70] sm:$0xff] %v146_v44 }
  0x10   :  { %204 = vst [vmem:[%s366_s2 + $0x78] sm:$0xff] %v156_v47 }

// kernel: vqvae_forward.1
= control target key start
LH: loop header
LB: loop body
LE: loop exit
PB: predicated region body
PF: predicated region fallthrough
CT: control target
= control target key end

     0   :  { %v1575_v0 = vmov 1   ;;  %v1576_v1 = vmov 0   ;;  %v1577_v5 = vmov 2   ;;  %v137_v24 = vlaneseq  ;;  %s1578_s6 = smov 96   ;;  %s1579_s9 = smov 112   ;;  %s1989_s0 = inlined_call_operand.vmem [shape: f32[128,3], index: 0, kind: input, shape index: {}]   ;;  %s1990_s1 = inlined_call_operand.vmem [shape: f32[32,128], index: 1, kind: input, shape index: {}]   ;;  %s1991_s2 = inlined_call_operand.vmem [shape: f32[16,128], index: 2, kind: input, shape index: {}]   ;;  %s1992_s3 = inlined_call_operand.vmem [shape: f32[128,8], index: 3, kind: input, shape index: {}]   ;;  %s1993_s4 = inlined_call_operand.vmem [shape: f32[8,128], index: 4, kind: output, shape index: {}]  }
   0x1   :  { %1519 = vset.pattern.permute.xlu0 %v1575_v0  ;;  %1521 = vset.pattern.permute.xlu1 %v1576_v1  ;;  %v42_v2 = vld [vmem:[%s1989_s0 + $0x8] sm:$0xff]  ;;  %v41_v3 = vld [vmem:[%s1989_s0] sm:$0xff]  ;;  %v44_v4 = vld [vmem:[%s1989_s0 + $0x18] sm:$0xff]  ;;  %vm397_vm0 = vcmask 261120   ;;  %vm687_vm1 = vcmask 1041409   ;;  %vm689_vm2 = vcmask 1042434  }
   0x2   :  { %64 = vperm.xlu1 %1521, %v42_v2   ;;  %158 = vperm.xlu0 %1519, %v41_v3   ;;  %v46_v6 = vld [vmem:[%s1989_s0 + $0x28] sm:$0xff]  ;;  %v43_v7 = vld [vmem:[%s1989_s0 + $0x10] sm:$0xff]  ;;  %v48_v8 = vld [vmem:[%s1989_s0 + $0x38] sm:$0xff]  ;;  %v138_v25 = vshrl.u32 %v137_v24, 7  ;;  %vm691_vm3 = vcmask 1043459   ;;  %vm693_vm4 = vcmask 1044484  }
   0x3   :  { %v50_v9 = vld [vmem:[%s1989_s0 + $0x48] sm:$0xff]  ;;  %v52_v10 = vld [vmem:[%s1989_s0 + $0x58] sm:$0xff]  ;;  %v45_v13 = vld [vmem:[%s1989_s0 + $0x20] sm:$0xff]  ;;  %vm695_vm5 = vcmask 1045509   ;;  %vm697_vm6 = vcmask 1046534   ;;  %vm699_vm7 = vcmask 1047559  }
   0x4   :  { %v54_v11 = vld [vmem:[%s1989_s0 + $0x68] sm:$0xff]  ;;  %v1654_v12 = vld [vmem:[%s1989_s0 + $0x78] sm:$0xff]  ;;  %v21_v14 = vld [vmem:[%s1990_s1] sm:$0xff]  ;;  %v223_v27 = vsub.s32 1, %v138_v25  ;;  %v139_v28 = vsub.s32 0, %v138_v25  ;;  %v323_v33 = vsub.s32 2, %v138_v25 }
   0x5   :  { %v22_v15 = vld [vmem:[%s1990_s1 + $0x8] sm:$0xff]  ;;  %v23_v17 = vld [vmem:[%s1990_s1 + $0x10] sm:$0xff]  ;;  %v1675_v18 = vld [vmem:[%s1990_s1 + $0x18] sm:$0xff]  ;;  %vm718_vm8 = vcmask 64512   ;;  %s1580_s10 = smov 120   ;;  %s1581_s11 = smov 104  }
   0x6   :  { %1522 = vset.pattern.permute.xlu1 %v1575_v0  ;;  %1520 = vset.pattern.permute.xlu0 %v1576_v1  ;;  %v1449_v16 = vpack.c.bf16 %v22_v15, %v21_v14  ;;  %v1453_v19 = vpack.c.bf16 %v1675_v18, %v23_v17  ;;  %v47_v20 = vld [vmem:[%s1989_s0 + $0x30] sm:$0xff]  ;;  %v49_v21 = vld [vmem:[%s1989_s0 + $0x40] sm:$0xff]  ;;  %v17_v31 = vld [vmem:[%s1991_s2 + $0x8] sm:$0x7]  ;;  %s1588_s26 = smov 16   ;;  %s1589_s27 = smov 64  }
   0x7   :  { %162 = vperm.xlu1 %1522, %v42_v2   ;;  %59 = vperm.xlu0 %1520, %v41_v3   ;;  %v51_v22 = vld [vmem:[%s1989_s0 + $0x50] sm:$0xff]  ;;  %v53_v23 = vld [vmem:[%s1989_s0 + $0x60] sm:$0xff]  ;;  %v1712_v32 = vrot.slane %v17_v31, %v223_v27  ;;  %v1714_v34 = vrot.slane %v17_v31, %v139_v28  ;;  %v1719_v39 = vrot.slane %v17_v31, %v323_v33  ;;  %v1726_v44 = vld [vmem:[%s1991_s2 + $0xb] ss:$0 sm:$0xff] }
   0x8   :  { %1450 = vmatprep.subr.bf16.mxu0 %v1449_v16  ;;  %v55_v26 = vld [vmem:[%s1989_s0 + $0x70] sm:$0xff]  ;;  %s1590_s0 = smov 32  }
   0x9   :  { %1452 = vmatpush3.bf16.msra.mxu0 %v1449_v16 }
   0xa   :  { %1454 = vmatprep.subr.bf16.mxu0 %v1453_v19 }
   0xb   :  { %1523 = vset.pattern.permute.xlu1 %v1577_v5  ;;  %74 = vperm.xlu0 %1520, %v44_v4  }
   0xc   :  { %258 = vperm.xlu1 %1523, %v41_v3  }
   0xd   :  { %1456 = vmatpush3.bf16.msra.mxu0 %v1453_v19 }
   0xf   :  { %84 = vperm.xlu0 %1520, %v46_v6  }
  0x10   :  { %1524 = vset.pattern.permute.xlu1 %v1576_v1 }
  0x11   :  { %69 = vperm.xlu1 %1524, %v43_v7  }
  0x13   :  { %94 = vperm.xlu0 %1520, %v48_v8  }
  0x15   :  { %1525 = vset.pattern.permute.xlu1 %v1575_v0 }
  0x16   :  { %166 = vperm.xlu1 %1525, %v43_v7  }
  0x17   :  { %104 = vperm.xlu0 %1520, %v50_v9  }
  0x1a   :  { %170 = vperm.xlu1 %1525, %v44_v4  }
  0x1b   :  { %114 = vperm.xlu0 %1520, %v52_v10  }
  0x1e   :  { %1526 = vset.pattern.permute.xlu1 %v1577_v5 }
  0x1f   :  { %266 = vperm.xlu1 %1526, %v43_v7   ;;  %124 = vperm.xlu0 %1520, %v54_v11  }
  0x23   :  { %1527 = vset.pattern.permute.xlu1 %v1576_v1  ;;  %134 = vperm.xlu0 %1520, %v1654_v12  }
  0x24   :  { %79 = vperm.xlu1 %1527, %v45_v13  }
  0x27   :  { %1544 = vset.pattern.permute.xlu0 %v1577_v5 }
  0x28   :  { %1528 = vset.pattern.permute.xlu1 %v1575_v0  ;;  %262 = vperm.xlu0 %1544, %v42_v2  }
  0x29   :  { %174 = vperm.xlu1 %1528, %v45_v13  }
  0x2c   :  { %270 = vperm.xlu0 %1544, %v44_v4  }
  0x2d   :  { %178 = vperm.xlu1 %1528, %v46_v6  }
  0x30   :  { %278 = vperm.xlu0 %1544, %v46_v6  }
  0x31   :  { %1529 = vset.pattern.permute.xlu1 %v1577_v5 }
  0x32   :  { %274 = vperm.xlu1 %1529, %v45_v13  }
  0x34   :  { %286 = vperm.xlu0 %1544, %v48_v8  }
  0x36   :  { %1530 = vset.pattern.permute.xlu1 %v1576_v1 }
  0x37   :  { %89 = vperm.xlu1 %1530, %v47_v20  }
  0x38   :  { %294 = vperm.xlu0 %1544, %v50_v9  }
  0x3b   :  { %1531 = vset.pattern.permute.xlu1 %v1575_v0 }
  0x3c   :  { %182 = vperm.xlu1 %1531, %v47_v20   ;;  %302 = vperm.xlu0 %1544, %v52_v10  }
  0x40   :  { %186 = vperm.xlu1 %1531, %v48_v8   ;;  %310 = vperm.xlu0 %1544, %v54_v11  }
  0x44   :  { %1532 = vset.pattern.permute.xlu1 %v1577_v5  ;;  %318 = vperm.xlu0 %1544, %v1654_v12  }
  0x45   :  { %282 = vperm.xlu1 %1532, %v47_v20  }
  0x49   :  { %1533 = vset.pattern.permute.xlu1 %v1576_v1 }
  0x4a   :  { %99 = vperm.xlu1 %1533, %v49_v21  }
  0x4e   :  { %1534 = vset.pattern.permute.xlu1 %v1575_v0 }
  0x4f   :  { %190 = vperm.xlu1 %1534, %v49_v21  }
  0x53   :  { %194 = vperm.xlu1 %1534, %v50_v9  }
  0x57   :  { %1535 = vset.pattern.permute.xlu1 %v1577_v5 }
  0x58   :  { %290 = vperm.xlu1 %1535, %v49_v21  }
  0x5c   :  { %1536 = vset.pattern.permute.xlu1 %v1576_v1 }
  0x5d   :  { %109 = vperm.xlu1 %1536, %v51_v22  }
  0x61   :  { %1537 = vset.pattern.permute.xlu1 %v1575_v0 }
  0x62   :  { %198 = vperm.xlu1 %1537, %v51_v22  }
  0x66   :  { %202 = vperm.xlu1 %1537, %v52_v10  }
  0x6a   :  { %1538 = vset.pattern.permute.xlu1 %v1577_v5 }
  0x6b   :  { %298 = vperm.xlu1 %1538, %v51_v22  }
  0x6f   :  { %1539 = vset.pattern.permute.xlu1 %v1576_v1 }
  0x70   :  { %119 = vperm.xlu1 %1539, %v53_v23  }
  0x74   :  { %1540 = vset.pattern.permute.xlu1 %v1575_v0 }
  0x75   :  { %206 = vperm.xlu1 %1540, %v53_v23  }
  0x79   :  { %210 = vperm.xlu1 %1540, %v54_v11  }
  0x7d   :  { %1541 = vset.pattern.permute.xlu1 %v1577_v5 }
  0x7e   :  { %306 = vperm.xlu1 %1541, %v53_v23  }
  0x81   :  { %v65_v29 = vpop.permute.xlu1 %64  ;;  %v159_v30 = vpop.permute.xlu0 %158 }
  0x82   :  { %1542 = vset.pattern.permute.xlu1 %v1576_v1  ;;  %v225_v35 = vmul.f32 %v1712_v32, %v159_v30 }
  0x83   :  { %129 = vperm.xlu1 %1542, %v55_v26  }
  0x86   :  { %v163_v36 = vpop.permute.xlu1 %162  ;;  %v60_v37 = vpop.permute.xlu0 %59 }
  0x87   :  { %1543 = vset.pattern.permute.xlu1 %v1575_v0  ;;  %v141_v38 = vmul.f32 %v1714_v34, %v60_v37  ;;  %v226_v62 = vmul.f32 %v1712_v32, %v163_v36  ;;  %v142_v0 = vmul.f32 %v1714_v34, %v65_v29 }
  0x88   :  { %214 = vperm.xlu1 %1543, %v55_v26  }
  0x89   :  { %v241_v40 = vadd.f32 %v225_v35, %v141_v38  ;;  %v242_v3 = vadd.f32 %v226_v62, %v142_v0 }
  0x8a   :  { %v75_v41 = vpop.permute.xlu0 %74 }
  0x8b   :  { %v259_v42 = vpop.permute.xlu1 %258  ;;  %v144_v4 = vmul.f32 %v1714_v34, %v75_v41 }
  0x8c   :  { %v325_v43 = vmul.f32 %v1719_v39, %v259_v42  ;;  %218 = vperm.xlu1 %1543, %v1654_v12  }
  0x8e   :  { %v341_v45 = vadd.f32 %v325_v43, %v241_v40  ;;  %v85_v46 = vpop.permute.xlu0 %84 }
  0x8f   :  { %v146_v9 = vmul.f32 %v1714_v34, %v85_v46 }
  0x90   :  { %1545 = vset.pattern.permute.xlu1 %v1577_v5  ;;  %v70_v47 = vpop.permute.xlu1 %69  ;;  %v361_v48 = vadd.f32 %v1726_v44, %v341_v45 }
  0x91   :  { %314 = vperm.xlu1 %1545, %v55_v26   ;;  %v143_v59 = vmul.f32 %v1714_v34, %v70_v47 }
  0x92   :  { %v95_v49 = vpop.permute.xlu0 %94  ;;  %v377_v50 = vmax.f32 %v361_v48, 0.0 }
  0x93   :  { %v148_v45 = vmul.f32 %v1714_v34, %v95_v49 }
  0x94   :  { %1357 = vmatprep.mubr.msk.f32.mxu0 %vm397_vm0, %v377_v50 }
  0x95   :  { %v167_v51 = vpop.permute.xlu1 %166  ;;  %394 = vrot.lane.b32.xlu1 %v1726_v44, %s1578_s6 }
  0x96   :  { %v1733_v52 = vpop.permute.xlu0 %104  ;;  %v227_v57 = vmul.f32 %v1712_v32, %v167_v51 }
  0x98   :  { %v243_v63 = vadd.f32 %v227_v57, %v143_v59 }
  0x99   :  { %v171_v53 = vpop.permute.xlu1 %170 }
  0x9a   :  { %v1735_v54 = vpop.permute.xlu0 %114  ;;  %v228_v5 = vmul.f32 %v1712_v32, %v171_v53 }
  0x9c   :  { %v244_v12 = vadd.f32 %v228_v5, %v144_v4  ;;  %v150_v4 = vmul.f32 %v1714_v34, %v1733_v52 }
  0x9e   :  { %v267_v55 = vpop.permute.xlu1 %266  ;;  %v1737_v56 = vpop.permute.xlu0 %124 }
  0x9f   :  { %v327_v60 = vmul.f32 %v1719_v39, %v267_v55 }
  0xa1   :  { %v343_v1 = vadd.f32 %v327_v60, %v243_v63 }
  0xa2   :  { %v1740_v58 = vpop.permute.xlu0 %134 }
  0xa3   :  { %v80_v61 = vpop.permute.xlu1 %79  ;;  %v363_v10 = vadd.f32 %v1726_v44, %v343_v1 }
  0xa4   :  { %v145_v25 = vmul.f32 %v1714_v34, %v80_v61 }
  0xa5   :  { %v379_v21 = vmax.f32 %v363_v10, 0.0 }
  0xa7   :  { %v263_v2 = vpop.permute.xlu0 %262 }
  0xa8   :  { %v326_v6 = vmul.f32 %v1719_v39, %v263_v2  ;;  %v175_v7 = vpop.permute.xlu1 %174 }
  0xa9   :  { %v229_v19 = vmul.f32 %v1712_v32, %v175_v7 }
  0xaa   :  { %v342_v8 = vadd.f32 %v326_v6, %v242_v3 }
  0xab   :  { %v271_v11 = vpop.permute.xlu0 %270  ;;  %v245_v29 = vadd.f32 %v229_v19, %v145_v25  ;;  %v152_v25 = vmul.f32 %v1714_v34, %v1735_v54 }
  0xac   :  { %v362_v13 = vadd.f32 %v1726_v44, %v342_v8  ;;  %v328_v14 = vmul.f32 %v1719_v39, %v271_v11  ;;  %v179_v15 = vpop.permute.xlu1 %178 }
  0xad   :  { %v230_v16 = vmul.f32 %v1712_v32, %v179_v15 }
  0xae   :  { %v378_v17 = vmax.f32 %v362_v13, 0.0  ;;  %v344_v20 = vadd.f32 %v328_v14, %v244_v12 }
  0xaf   :  { %v246_v22 = vadd.f32 %v230_v16, %v146_v9  ;;  %v279_v23 = vpop.permute.xlu0 %278 }
  0xb0   :  { %v364_v26 = vadd.f32 %v1726_v44, %v344_v20  ;;  %v330_v27 = vmul.f32 %v1719_v39, %v279_v23  ;;  %1358 = vmatmul.mubr.msk.f32.vlgmr.msra.gmra.mrb[0].mxu0 %vm397_vm0, %v378_v17 }
  0xb1   :  { %v275_v28 = vpop.permute.xlu1 %274  ;;  %1360 = vmatprep.mubr.msk.f32.mxu0 %vm397_vm0, %v379_v21 }
  0xb2   :  { %v380_v30 = vmax.f32 %v364_v26, 0.0  ;;  %v346_v31 = vadd.f32 %v330_v27, %v246_v22  ;;  %v329_v33 = vmul.f32 %v1719_v39, %v275_v28 }
  0xb3   :  { %v287_v43 = vpop.permute.xlu0 %286 }
  0xb4   :  { %v345_v35 = vadd.f32 %v329_v33, %v245_v29  ;;  %1361 = vmatmul.mubr.msk.f32.gmra.mrb[2].mxu0 %vm397_vm0, %v380_v30  ;;  %v366_v36 = vadd.f32 %v1726_v44, %v346_v31  ;;  %v332_v48 = vmul.f32 %v1719_v39, %v287_v43 }
  0xb6   :  { %v365_v37 = vadd.f32 %v1726_v44, %v345_v35  ;;  %v90_v38 = vpop.permute.xlu1 %89  ;;  %v382_v41 = vmax.f32 %v366_v36, 0.0 }
  0xb7   :  { %v147_v53 = vmul.f32 %v1714_v34, %v90_v38  ;;  %v295_v3 = vpop.permute.xlu0 %294 }
  0xb8   :  { %v381_v40 = vmax.f32 %v365_v37, 0.0  ;;  %v334_v7 = vmul.f32 %v1719_v39, %v295_v3 }
  0xba   :  { %1363 = vmatprep.mubr.msk.f32.mxu0 %vm397_vm0, %v381_v40 }
  0xbb   :  { %v183_v42 = vpop.permute.xlu1 %182  ;;  %1364 = vmatmul.mubr.msk.f32.gmra.mrb[4].mxu0 %vm397_vm0, %v382_v41  ;;  %v303_v22 = vpop.permute.xlu0 %302 }
  0xbc   :  { %v231_v50 = vmul.f32 %v1712_v32, %v183_v42  ;;  %v336_v27 = vmul.f32 %v1719_v39, %v303_v22 }
  0xbe   :  { %v247_v59 = vadd.f32 %v231_v50, %v147_v53 }
  0xbf   :  { %v187_v46 = vpop.permute.xlu1 %186 }
  0xc0   :  { %v232_v47 = vmul.f32 %v1712_v32, %v187_v46  ;;  %v154_v46 = vmul.f32 %v1714_v34, %v1737_v56 }
  0xc2   :  { %v248_v51 = vadd.f32 %v232_v47, %v148_v45 }
  0xc4   :  { %v348_v55 = vadd.f32 %v332_v48, %v248_v51  ;;  %v283_v57 = vpop.permute.xlu1 %282  ;;  %v311_v48 = vpop.permute.xlu0 %310 }
  0xc5   :  { %v331_v60 = vmul.f32 %v1719_v39, %v283_v57  ;;  %v338_v51 = vmul.f32 %v1719_v39, %v311_v48 }
  0xc6   :  { %v368_v62 = vadd.f32 %v1726_v44, %v348_v55 }
  0xc7   :  { %v347_v61 = vadd.f32 %v331_v60, %v247_v59 }
  0xc8   :  { %v384_v1 = vmax.f32 %v368_v62, 0.0  ;;  %v319_v3 = vpop.permute.xlu0 %318 }
  0xc9   :  { %v367_v49 = vadd.f32 %v1726_v44, %v347_v61  ;;  %v100_v63 = vpop.permute.xlu1 %99 }
  0xca   :  { %v149_v10 = vmul.f32 %v1714_v34, %v100_v63 }
  0xcb   :  { %v383_v0 = vmax.f32 %v367_v49, 0.0 }
  0xcd   :  { %1366 = vmatprep.mubr.msk.f32.mxu0 %vm397_vm0, %v383_v0 }
  0xce   :  { %v191_v2 = vpop.permute.xlu1 %190  ;;  %1367 = vmatmul.mubr.msk.f32.gmra.mrb[6].mxu0 %vm397_vm0, %v384_v1 }
  0xcf   :  { %v233_v8 = vmul.f32 %v1712_v32, %v191_v2 }
  0xd1   :  { %v249_v13 = vadd.f32 %v233_v8, %v149_v10  ;;  %v340_v8 = vmul.f32 %v1719_v39, %v319_v3 }
  0xd2   :  { %v195_v5 = vpop.permute.xlu1 %194 }
  0xd3   :  { %v234_v6 = vmul.f32 %v1712_v32, %v195_v5  ;;  %v156_v5 = vmul.f32 %v1714_v34, %v1740_v58 }
  0xd5   :  { %v250_v9 = vadd.f32 %v234_v6, %v150_v4 }
  0xd7   :  { %v350_v11 = vadd.f32 %v334_v7, %v250_v9  ;;  %v291_v12 = vpop.permute.xlu1 %290 }
  0xd8   :  { %v333_v14 = vmul.f32 %v1719_v39, %v291_v12 }
  0xd9   :  { %v370_v16 = vadd.f32 %v1726_v44, %v350_v11 }
  0xda   :  { %v349_v15 = vadd.f32 %v333_v14, %v249_v13 }
  0xdb   :  { %v386_v20 = vmax.f32 %v370_v16, 0.0 }
  0xdc   :  { %v369_v52 = vadd.f32 %v1726_v44, %v349_v15  ;;  %v110_v17 = vpop.permute.xlu1 %109 }
  0xdd   :  { %v151_v30 = vmul.f32 %v1714_v34, %v110_v17 }
  0xde   :  { %v385_v19 = vmax.f32 %v369_v52, 0.0 }
  0xe0   :  { %1369 = vmatprep.mubr.msk.f32.mxu0 %vm397_vm0, %v385_v19 }
  0xe1   :  { %v199_v21 = vpop.permute.xlu1 %198  ;;  %1370 = vmatmul.mubr.msk.f32.gmra.mrb[8].mxu0 %vm397_vm0, %v386_v20 }
  0xe2   :  { %v235_v28 = vmul.f32 %v1712_v32, %v199_v21 }
  0xe4   :  { %v251_v35 = vadd.f32 %v235_v28, %v151_v30 }
  0xe5   :  { %v203_v23 = vpop.permute.xlu1 %202 }
  0xe6   :  { %v236_v26 = vmul.f32 %v1712_v32, %v203_v23 }
  0xe8   :  { %v252_v29 = vadd.f32 %v236_v26, %v152_v25 }
  0xea   :  { %v352_v31 = vadd.f32 %v336_v27, %v252_v29  ;;  %v299_v33 = vpop.permute.xlu1 %298 }
  0xeb   :  { %v335_v36 = vmul.f32 %v1719_v39, %v299_v33 }
  0xec   :  { %v372_v38 = vadd.f32 %v1726_v44, %v352_v31 }
  0xed   :  { %v351_v37 = vadd.f32 %v335_v36, %v251_v35 }
  0xee   :  { %v388_v42 = vmax.f32 %v372_v38, 0.0 }
  0xef   :  { %v371_v40 = vadd.f32 %v1726_v44, %v351_v37  ;;  %v120_v54 = vpop.permute.xlu1 %119 }
  0xf0   :  { %v153_v55 = vmul.f32 %v1714_v34, %v120_v54 }
  0xf1   :  { %v387_v41 = vmax.f32 %v371_v40, 0.0 }
  0xf3   :  { %1372 = vmatprep.mubr.msk.f32.mxu0 %vm397_vm0, %v387_v41 }
  0xf4   :  { %v207_v43 = vpop.permute.xlu1 %206  ;;  %1373 = vmatmul.mubr.msk.f32.gmra.mrb[10].mxu0 %vm397_vm0, %v388_v42 }
  0xf5   :  { %v237_v50 = vmul.f32 %v1712_v32, %v207_v43 }
  0xf7   :  { %v253_v60 = vadd.f32 %v237_v50, %v153_v55 }
  0xf8   :  { %v211_v45 = vpop.permute.xlu1 %210 }
  0xf9   :  { %v238_v47 = vmul.f32 %v1712_v32, %v211_v45 }
  0xfb   :  { %v254_v53 = vadd.f32 %v238_v47, %v154_v46 }
  0xfd   :  { %v354_v57 = vadd.f32 %v338_v51, %v254_v53  ;;  %v307_v59 = vpop.permute.xlu1 %306 }
  0xfe   :  { %v337_v61 = vmul.f32 %v1719_v39, %v307_v59 }
  0xff   :  { %v374_v49 = vadd.f32 %v1726_v44, %v354_v57 }
 0x100   :  { %v353_v62 = vadd.f32 %v337_v61, %v253_v60 }
 0x101   :  { %v390_v1 = vmax.f32 %v374_v49, 0.0 }
 0x102   :  { %v373_v56 = vadd.f32 %v1726_v44, %v353_v62  ;;  %v130_v63 = vpop.permute.xlu1 %129 }
 0x103   :  { %v155_v10 = vmul.f32 %v1714_v34, %v130_v63 }
 0x104   :  { %v389_v0 = vmax.f32 %v373_v56, 0.0 }
 0x106   :  { %1375 = vmatprep.mubr.msk.f32.mxu0 %vm397_vm0, %v389_v0 }
 0x107   :  { %v215_v2 = vpop.permute.xlu1 %214  ;;  %1376 = vmatmul.mubr.msk.f32.gmra.mrb[12].mxu0 %vm397_vm0, %v390_v1 }
 0x108   :  { %v239_v7 = vmul.f32 %v1712_v32, %v215_v2 }
 0x10a   :  { %v255_v13 = vadd.f32 %v239_v7, %v155_v10 }
 0x10b   :  { %v219_v4 = vpop.permute.xlu1 %218 }
 0x10c   :  { %v240_v6 = vmul.f32 %v1712_v32, %v219_v4 }
 0x10e   :  { %v256_v9 = vadd.f32 %v240_v6, %v156_v5 }
 0x110   :  { %v356_v11 = vadd.f32 %v340_v8, %v256_v9  ;;  %v315_v12 = vpop.permute.xlu1 %314 }
 0x111   :  { %v339_v14 = vmul.f32 %v1719_v39, %v315_v12 }
 0x112   :  { %v376_v16 = vadd.f32 %v1726_v44, %v356_v11 }
 0x113   :  { %v355_v15 = vadd.f32 %v339_v14, %v255_v13 }
 0x114   :  { %v392_v17 = vmax.f32 %v376_v16, 0.0  ;;  %v1820_v32 = vpop.permute.xlu1 %394 }
 0x115   :  { %v375_v52 = vadd.f32 %v1726_v44, %v355_v15  ;;  %v1827_v44 = vld [vmem:[%s1991_s2] sm:$0xff] }
 0x116   :  { %1381 = vmatprep.subr.mxu1 %v1827_v44 }
 0x117   :  { %v391_v58 = vmax.f32 %v375_v52, 0.0  ;;  %1382 = vmatpush3.msra.mxu1 %v1827_v44 }
 0x119   :  { %1378 = vmatprep.mubr.msk.f32.mxu0 %vm397_vm0, %v391_v58 }
 0x11a   :  { %1379 = vmatmul.mubr.msk.f32.gmra.mrb[14].mxu0 %vm397_vm0, %v392_v17 }
 0x183   :  { %v1359_v19 = vpop.f32.mrb[0].mxu0 }
 0x184   :  { %v518_v34 = vadd.f32 %v1359_v19, %v1820_v32  ;;  %v512_v20 = vpop.f32.mrb[1].mxu0 }
 0x185   :  { %v513_v21 = vadd.f32 %v512_v20, %v1820_v32 }
 0x186   :  { %v592_v39 = vmax.f32 %v518_v34, 0.0 }
 0x187   :  { %v591_v22 = vmax.f32 %v513_v21, 0.0  ;;  %v1362_v23 = vpop.f32.mrb[2].mxu0 }
 0x188   :  { %v608_v25 = vsel %vm397_vm0, %v592_v39, -inf  ;;  %v528_v26 = vadd.f32 %v1362_v23, %v1820_v32  ;;  %v522_v27 = vpop.f32.mrb[3].mxu0 }
 0x189   :  { %v607_v28 = vsel %vm397_vm0, %v591_v22, -inf  ;;  %v523_v29 = vadd.f32 %v522_v27, %v1820_v32 }
 0x18a   :  { %v609_v30 = vmax.f32 %v607_v28, %v608_v25  ;;  %v594_v31 = vmax.f32 %v528_v26, 0.0 }
 0x18b   :  { %v593_v33 = vmax.f32 %v523_v29, 0.0 }
 0x18c   :  { %v610_v35 = vrot.slane %v609_v30, 4  ;;  %v617_v36 = vsel %vm397_vm0, %v594_v31, -inf }
 0x18d   :  { %v616_v37 = vsel %vm397_vm0, %v593_v33, -inf }
 0x18e   :  { %v611_v38 = vmax.f32 %v609_v30, %v610_v35  ;;  %v618_v40 = vmax.f32 %v616_v37, %v617_v36  ;;  %v1365_v54 = vpop.f32.mrb[4].mxu0 }
 0x18f   :  { %v538_v41 = vadd.f32 %v1365_v54, %v1820_v32  ;;  %v532_v42 = vpop.f32.mrb[5].mxu0 }
 0x190   :  { %v612_v43 = vrot.slane %v611_v38, 2  ;;  %v619_v45 = vrot.slane %v618_v40, 4  ;;  %v533_v46 = vadd.f32 %v532_v42, %v1820_v32 }
 0x191   :  { %v596_v47 = vmax.f32 %v538_v41, 0.0 }
 0x192   :  { %v613_v48 = vmax.f32 %v611_v38, %v612_v43  ;;  %v620_v50 = vmax.f32 %v618_v40, %v619_v45  ;;  %v595_v51 = vmax.f32 %v533_v46, 0.0 }
 0x193   :  { %v626_v53 = vsel %vm397_vm0, %v596_v47, -inf }
 0x194   :  { %v621_v55 = vrot.slane %v620_v50, 2  ;;  %v625_v57 = vsel %vm397_vm0, %v595_v51, -inf  ;;  %v614_v60 = vrot.slane %v613_v48, 1 }
 0x195   :  { %v627_v59 = vmax.f32 %v625_v57, %v626_v53 }
 0x196   :  { %v622_v61 = vmax.f32 %v620_v50, %v621_v55  ;;  %v615_v63 = vmax.f32 %v613_v48, %v614_v60 }
 0x197   :  { %v628_v62 = vrot.slane %v627_v59, 4 }
 0x198   :  { %v623_v49 = vrot.slane %v622_v61, 1 }
 0x199   :  { %v629_v56 = vmax.f32 %v627_v59, %v628_v62 }
 0x19a   :  { %v624_v0 = vmax.f32 %v622_v61, %v623_v49 }
 0x19b   :  { %v630_v1 = vrot.slane %v629_v56, 2 }
 0x19c   :  { %v688_v2 = vsel %vm687_vm1, %v624_v0, %v615_v63 }
 0x19d   :  { %v631_v3 = vmax.f32 %v629_v56, %v630_v1 }
 0x19f   :  { %v632_v4 = vrot.slane %v631_v3, 1 }
 0x1a1   :  { %v633_v5 = vmax.f32 %v631_v3, %v632_v4  ;;  %v1368_v6 = vpop.f32.mrb[6].mxu0 }
 0x1a2   :  { %v548_v7 = vadd.f32 %v1368_v6, %v1820_v32  ;;  %v542_v8 = vpop.f32.mrb[7].mxu0 }
 0x1a3   :  { %v690_v9 = vsel %vm689_vm2, %v633_v5, %v688_v2  ;;  %v543_v10 = vadd.f32 %v542_v8, %v1820_v32 }
 0x1a4   :  { %v598_v11 = vmax.f32 %v548_v7, 0.0 }
 0x1a5   :  { %v597_v12 = vmax.f32 %v543_v10, 0.0 }
 0x1a6   :  { %v635_v13 = vsel %vm397_vm0, %v598_v11, -inf }
 0x1a7   :  { %v634_v14 = vsel %vm397_vm0, %v597_v12, -inf }
 0x1a8   :  { %v636_v15 = vmax.f32 %v634_v14, %v635_v13 }
 0x1aa   :  { %v637_v16 = vrot.slane %v636_v15, 4 }
 0x1ac   :  { %v638_v52 = vmax.f32 %v636_v15, %v637_v16 }
 0x1ae   :  { %v639_v58 = vrot.slane %v638_v52, 2 }
 0x1b0   :  { %v640_v17 = vmax.f32 %v638_v52, %v639_v58 }
 0x1b2   :  { %v641_v19 = vrot.slane %v640_v17, 1 }
 0x1b4   :  { %v642_v34 = vmax.f32 %v640_v17, %v641_v19  ;;  %v1371_v20 = vpop.f32.mrb[8].mxu0 }
 0x1b5   :  { %v558_v21 = vadd.f32 %v1371_v20, %v1820_v32  ;;  %v552_v39 = vpop.f32.mrb[9].mxu0 }
 0x1b6   :  { %v692_v22 = vsel %vm691_vm3, %v642_v34, %v690_v9  ;;  %v553_v23 = vadd.f32 %v552_v39, %v1820_v32 }
 0x1b7   :  { %v600_v25 = vmax.f32 %v558_v21, 0.0 }
 0x1b8   :  { %v599_v26 = vmax.f32 %v553_v23, 0.0 }
 0x1b9   :  { %v644_v27 = vsel %vm397_vm0, %v600_v25, -inf }
 0x1ba   :  { %v643_v28 = vsel %vm397_vm0, %v599_v26, -inf }
 0x1bb   :  { %v645_v29 = vmax.f32 %v643_v28, %v644_v27  ;;  %v711_v27 = vmul.f32 %v1827_v44, %v1827_v44 }
 0x1bd   :  { %v646_v30 = vrot.slane %v645_v29, 4  ;;  %v712_v28 = vrot.slane %v711_v27, 4 }
 0x1bf   :  { %v647_v31 = vmax.f32 %v645_v29, %v646_v30  ;;  %v713_v29 = vadd.f32 %v712_v28, %v711_v27 }
 0x1c1   :  { %v648_v33 = vrot.slane %v647_v31, 2  ;;  %v714_v30 = vrot.slane %v713_v29, 2 }
 0x1c3   :  { %v649_v35 = vmax.f32 %v647_v31, %v648_v33  ;;  %v715_v31 = vadd.f32 %v714_v30, %v713_v29 }
 0x1c5   :  { %v650_v36 = vrot.slane %v649_v35, 1  ;;  %v716_v33 = vrot.slane %v715_v31, 1 }
 0x1c7   :  { %v651_v37 = vmax.f32 %v649_v35, %v650_v36  ;;  %v1374_v38 = vpop.f32.mrb[10].mxu0  ;;  %v717_v35 = vadd.f32 %v716_v33, %v715_v31 }
 0x1c8   :  { %v568_v40 = vadd.f32 %v1374_v38, %v1820_v32  ;;  %v562_v54 = vpop.f32.mrb[11].mxu0 }
 0x1c9   :  { %v563_v41 = vadd.f32 %v562_v54, %v1820_v32  ;;  %v694_v42 = vsel %vm693_vm4, %v651_v37, %v692_v22 }
 0x1ca   :  { %v602_v43 = vmax.f32 %v568_v40, 0.0 }
 0x1cb   :  { %v601_v45 = vmax.f32 %v563_v41, 0.0 }
 0x1cc   :  { %v653_v46 = vsel %vm397_vm0, %v602_v43, -inf }
 0x1cd   :  { %v652_v47 = vsel %vm397_vm0, %v601_v45, -inf }
 0x1ce   :  { %v654_v48 = vmax.f32 %v652_v47, %v653_v46 }
 0x1d0   :  { %v655_v50 = vrot.slane %v654_v48, 4 }
 0x1d2   :  { %v656_v51 = vmax.f32 %v654_v48, %v655_v50  ;;  %v1883_v48 = vand.u32 127, %v137_v24 }
 0x1d4   :  { %v657_v53 = vrot.slane %v656_v51, 2 }
 0x1d6   :  { %v658_v55 = vmax.f32 %v656_v51, %v657_v53 }
 0x1d8   :  { %v659_v57 = vrot.slane %v658_v55, 1 }
 0x1da   :  { %v660_v59 = vmax.f32 %v658_v55, %v659_v57  ;;  %v1377_v60 = vpop.f32.mrb[12].mxu0 }
 0x1db   :  { %v578_v61 = vadd.f32 %v1377_v60, %v1820_v32  ;;  %v572_v62 = vpop.f32.mrb[13].mxu0 }
 0x1dc   :  { %v573_v49 = vadd.f32 %v572_v62, %v1820_v32  ;;  %v696_v56 = vsel %vm695_vm5, %v660_v59, %v694_v42 }
 0x1dd   :  { %v604_v63 = vmax.f32 %v578_v61, 0.0 }
 0x1de   :  { %v603_v0 = vmax.f32 %v573_v49, 0.0 }
 0x1df   :  { %v662_v1 = vsel %vm397_vm0, %v604_v63, -inf }
 0x1e0   :  { %v661_v2 = vsel %vm397_vm0, %v603_v0, -inf }
 0x1e1   :  { %v663_v3 = vmax.f32 %v661_v2, %v662_v1 }
 0x1e3   :  { %v664_v4 = vrot.slane %v663_v3, 4 }
 0x1e5   :  { %v665_v5 = vmax.f32 %v663_v3, %v664_v4  ;;  %v25_v3 = vld [vmem:[%s1992_s3] sm:$0xff]  ;;  %v26_v4 = vld [vmem:[%s1992_s3 + $0x8] sm:$0xff] }
 0x1e7   :  { %v666_v6 = vrot.slane %v665_v5, 2 }
 0x1e9   :  { %v667_v7 = vmax.f32 %v665_v5, %v666_v6  ;;  %v27_v5 = vld [vmem:[%s1992_s3 + $0x10] sm:$0xff]  ;;  %v1457_v6 = vpack.c.bf16 %v26_v4, %v25_v3 }
 0x1eb   :  { %v668_v8 = vrot.slane %v667_v7, 1  ;;  %1458 = vmatprep.subr.bf16.mxu1 %v1457_v6 }
 0x1ed   :  { %v669_v9 = vmax.f32 %v667_v7, %v668_v8  ;;  %v1380_v10 = vpop.f32.mrb[14].mxu0  ;;  %v28_v7 = vld [vmem:[%s1992_s3 + $0x18] sm:$0xff] }
 0x1ee   :  { %v588_v11 = vadd.f32 %v1380_v10, %v1820_v32  ;;  %v582_v12 = vpop.f32.mrb[15].mxu0  ;;  %v1461_v8 = vpack.c.bf16 %v28_v7, %v27_v5  ;;  %v30_v10 = vld [vmem:[%s1992_s3 + $0x28] sm:$0xff]  ;;  %v1582_v7 = vmov 0.0  }
 0x1ef   :  { %v583_v13 = vadd.f32 %v582_v12, %v1820_v32  ;;  %v698_v14 = vsel %vm697_vm6, %v669_v9, %v696_v56  ;;  %v29_v9 = vld [vmem:[%s1992_s3 + $0x20] sm:$0xff]  ;;  %v31_v12 = vld [vmem:[%s1992_s3 + $0x30] sm:$0xff] }
 0x1f0   :  { %v606_v15 = vmax.f32 %v588_v11, 0.0  ;;  %v1465_v11 = vpack.c.bf16 %v30_v10, %v29_v9  ;;  %v1583_v10 = vmov 1.0  }
 0x1f1   :  { %v605_v16 = vmax.f32 %v583_v13, 0.0  ;;  %v32_v13 = vld [vmem:[%s1992_s3 + $0x38] sm:$0xff] }
 0x1f2   :  { %v671_v52 = vsel %vm397_vm0, %v606_v15, -inf  ;;  %v33_v15 = vld [vmem:[%s1992_s3 + $0x40] sm:$0xff] }
 0x1f3   :  { %v670_v58 = vsel %vm397_vm0, %v605_v16, -inf  ;;  %v34_v16 = vld [vmem:[%s1992_s3 + $0x48] sm:$0xff] }
 0x1f4   :  { %v672_v17 = vmax.f32 %v670_v58, %v671_v52  ;;  %v1473_v52 = vpack.c.bf16 %v34_v16, %v33_v15  ;;  %v35_v58 = vld [vmem:[%s1992_s3 + $0x50] sm:$0xff] }
 0x1f6   :  { %v673_v19 = vrot.slane %v672_v17, 4 }
 0x1f8   :  { %v674_v34 = vmax.f32 %v672_v17, %v673_v19  ;;  %v36_v17 = vld [vmem:[%s1992_s3 + $0x58] sm:$0xff] }
 0x1f9   :  { %v1477_v19 = vpack.c.bf16 %v36_v17, %v35_v58 }
 0x1fa   :  { %v675_v20 = vrot.slane %v674_v34, 2 }
 0x1fc   :  { %v676_v21 = vmax.f32 %v674_v34, %v675_v20 }
 0x1fe   :  { %v677_v39 = vrot.slane %v676_v21, 1 }
 0x200   :  { %v678_v22 = vmax.f32 %v676_v21, %v677_v39 }
 0x202   :  { %v1861_v23 = vsel %vm699_vm7, %v678_v22, %v698_v14  ;;  %v1469_v14 = vpack.c.bf16 %v32_v13, %v31_v12 }
 0x203   :  { %705 = vrot.lane.b32.xlu0 %v1861_v23, %s1579_s9  ;;  %702 = vrot.lane.b32.xlu1 %v1861_v23, %s1580_s10 }
 0x204   :  { %1383 = vmatprep.mubr.msk.f32.mxu1 %vm718_vm8, %v1861_v23 }
 0x207   :  { %708 = vrot.lane.b32.xlu1 %v1861_v23, %s1581_s11 }
 0x275   :  { %v1868_v32 = vpop.permute.xlu0 %705  ;;  %v1870_v25 = vpop.permute.xlu1 %702 }
 0x276   :  { %1384 = vmatmul.mubr.msk.f32.vlgmr.msra.gmra.mrb[0].mxu1 %vm718_vm8, %v1870_v25 }
 0x277   :  { %1386 = vmatprep.mubr.msk.f32.mxu1 %vm718_vm8, %v1868_v32  ;;  %1460 = vmatpush3.bf16.msra.mxu1 %v1457_v6 }
 0x278   :  { %1462 = vmatprep.subr.bf16.mxu1 %v1461_v8 }
 0x279   :  { %v1876_v26 = vpop.permute.xlu1 %708 }
 0x27a   :  { %1387 = vmatmul.mubr.msk.f32.gmra.mrb[2].mxu1 %vm718_vm8, %v1876_v26 }
 0x27b   :  { %1464 = vmatpush3.bf16.msra.mxu1 %v1461_v8 }
 0x27c   :  { %1466 = vmatprep.subr.bf16.mxu1 %v1465_v11 }
 0x27f   :  { %1468 = vmatpush3.bf16.msra.mxu1 %v1465_v11 }
 0x280   :  { %1470 = vmatprep.subr.bf16.mxu1 %v1469_v14 }
 0x283   :  { %1472 = vmatpush3.bf16.msra.mxu1 %v1469_v14 }
 0x284   :  { %1474 = vmatprep.subr.bf16.mxu1 %v1473_v52 }
 0x287   :  { %1476 = vmatpush3.bf16.msra.mxu1 %v1473_v52 }
 0x288   :  { %1478 = vmatprep.subr.bf16.mxu1 %v1477_v19 }
 0x28b   :  { %1480 = vmatpush3.bf16.msra.mxu1 %v1477_v19 }
 0x349   :  { %v1385_v36 = vpop.f32.mrb[0].mxu1 }
 0x34a   :  { %v813_v37 = vmul.f32 2.0, %v1385_v36  ;;  %v793_v38 = vpop.f32.mrb[1].mxu1 }
 0x34b   :  { %v812_v40 = vmul.f32 2.0, %v793_v38 }
 0x34c   :  { %v817_v54 = vsub.f32 %v717_v35, %v813_v37 }
 0x34d   :  { %v1388_v41 = vpop.f32.mrb[2].mxu1  ;;  %v816_v42 = vsub.f32 %v717_v35, %v812_v40 }
 0x34e   :  { %v815_v43 = vmul.f32 2.0, %v1388_v41  ;;  %824 = vmin.xlane.f32.xlu1 %v817_v54  ;;  %v803_v45 = vpop.f32.mrb[3].mxu1  ;;  %v38_v41 = vld [vmem:[%s1992_s3 + $0x68] sm:$0xff] }
 0x34f   :  { %v814_v46 = vmul.f32 2.0, %v803_v45  ;;  %822 = vmin.xlane.f32.xlu0 %v816_v42  ;;  %v40_v45 = vld [vmem:[%s1992_s3 + $0x78] sm:$0xff] }
 0x350   :  { %v819_v47 = vsub.f32 %v717_v35, %v815_v43  ;;  %v39_v43 = vld [vmem:[%s1992_s3 + $0x70] sm:$0xff] }
 0x351   :  { %v818_v44 = vsub.f32 %v717_v35, %v814_v46  ;;  %v1485_v46 = vpack.c.bf16 %v40_v45, %v39_v43 }
 0x353   :  { %826 = vmin.xlane.f32.xlu0 %v818_v44 }
 0x357   :  { %828 = vmin.xlane.f32.xlu0 %v819_v47 }
 0x3db   :  { %v825_v50 = vpop.xlane.xlu1 %824 }
 0x3dc   :  { %vm831_vm9 = vcmp.le.f32.partialorder %v817_v54, %v825_v50  ;;  %v823_v51 = vpop.xlane.xlu0 %822  ;;  %v37_v54 = vld [vmem:[%s1992_s3 + $0x60] sm:$0xff]  ;;  %s1586_s3 = smov 8  }
 0x3dd   :  { %v835_v53 = vsel %vm831_vm9, %v1883_v48, 128  ;;  %vm830_vm10 = vcmp.le.f32.partialorder %v816_v42, %v823_v51  ;;  %v1481_v42 = vpack.c.bf16 %v38_v41, %v37_v54  ;;  %v1948_v51 = vld [vmem:[%s1990_s1 + $0x10] sm:$0xff] }
 0x3de   :  { %v834_v55 = vsel %vm830_vm10, %v1883_v48, 128  ;;  %v853_v57 = vshra.s32 %v835_v53, 16  ;;  %v852_v34 = vand.u32 65535, %v835_v53  ;;  %v1551_v53 = vpack.i.bf16 %v1675_v18, %v1948_v51 }
 0x3df   :  { %v839_v59 = vshra.s32 %v834_v55, 16  ;;  %v838_v20 = vand.u32 65535, %v834_v55  ;;  %1482 = vmatprep.subr.bf16.mxu1 %v1481_v42 }
 0x3e0   :  { %v827_v60 = vpop.xlane.xlu0 %826  ;;  %v855_v61 = vcvt.s32.f32 %v853_v57  ;;  %v854_v39 = vcvt.s32.f32 %v852_v34  ;;  %1484 = vmatpush3.bf16.msra.mxu1 %v1481_v42 }
 0x3e1   :  { %vm832_vm11 = vcmp.le.f32.partialorder %v818_v44, %v827_v60  ;;  %v841_v62 = vcvt.s32.f32 %v839_v59  ;;  %v840_v28 = vcvt.s32.f32 %v838_v20  ;;  %1486 = vmatprep.subr.bf16.mxu1 %v1485_v46  ;;  %v1571_v44 = vld [vmem:[%s1990_s1 + $0x8] sm:$0xff] }
 0x3e2   :  { %v836_v49 = vsel %vm832_vm11, %v1883_v48, 128  ;;  %856 = vmin.xlane.f32.xlu0 %v855_v61  ;;  %vm1585_vm11 = vmmov 0  }
 0x3e3   :  { %842 = vmin.xlane.f32.xlu1 %v841_v62  ;;  %v867_v24 = vshra.s32 %v836_v49, 16  ;;  %v866_v22 = vand.u32 65535, %v836_v49  ;;  %1435 = vmatprep.mubr.msk.f32.mxu0 %vm1585_vm11, %v1582_v7 }
 0x3e4   :  { %v829_v56 = vpop.xlane.xlu0 %828  ;;  %1488 = vmatpush3.bf16.msra.mxu1 %v1485_v46 }
 0x3e5   :  { %vm833_vm12 = vcmp.le.f32.partialorder %v819_v47, %v829_v56  ;;  %v869_v63 = vcvt.s32.f32 %v867_v24  ;;  %v868_v35 = vcvt.s32.f32 %v866_v22  ;;  %v1570_v47 = vld [vmem:[%s1990_s1] sm:$0xff] }
 0x3e6   :  { %v837_v0 = vsel %vm833_vm12, %v1883_v48, 128  ;;  %v1943_v50 = vpack.i.bf16 %v1571_v44, %v1570_v47  ;;  %v1573_v47 = vld [vmem:[%s1990_s1 + $0x18] sm:$0xff]  ;;  %vm1060_vm12 = vcmask 130048  }
 0x3e7   :  { %870 = vmin.xlane.f32.xlu1 %v869_v63  ;;  %v881_v1 = vshra.s32 %v837_v0, 16  ;;  %v880_v31 = vand.u32 65535, %v837_v0 }
 0x3e9   :  { %v883_v2 = vcvt.s32.f32 %v881_v1  ;;  %v882_v38 = vcvt.s32.f32 %v880_v31 }
 0x3eb   :  { %884 = vmin.xlane.f32.xlu0 %v883_v2 }
 0x46f   :  { %v857_v21 = vpop.xlane.xlu0 %856 }
 0x470   :  { %v843_v27 = vpop.xlane.xlu1 %842  ;;  %vm858_vm13 = vcmp.eq.f32.partialorder %v855_v61, %v857_v21  ;;  %v863_v55 = vcvt.f32.s32 %v857_v21 }
 0x471   :  { %v859_v29 = vsel %vm858_vm13, %v854_v39, inf  ;;  %vm844_vm14 = vcmp.eq.f32.partialorder %v841_v62, %v843_v27  ;;  %v849_v57 = vcvt.f32.s32 %v843_v27  ;;  %v1584_v27 = vmov 0.0|0.0  }
 0x472   :  { %860 = vmin.xlane.f32.xlu0 %v859_v29  ;;  %v845_v30 = vsel %vm844_vm14, %v840_v28, inf  ;;  %v864_v60 = vshll.u32 %v863_v55, 16  ;;  %1489 = vmatprep.subr.bf16.mxu0 %v1584_v27  ;;  %vm1062_vm13 = vcmask 195584   ;;  %vm1253_vm14 = vcmask 662528  }
 0x473   :  { %846 = vmin.xlane.f32.xlu1 %v845_v30  ;;  %v850_v24 = vshll.u32 %v849_v57, 16  ;;  %1495 = vmatprep.subr.bf16.mxu1 %v1584_v27 }
 0x474   :  { %v871_v33 = vpop.xlane.xlu1 %870 }
 0x475   :  { %vm872_vm15 = vcmp.eq.f32.partialorder %v869_v63, %v871_v33  ;;  %v877_v61 = vcvt.f32.s32 %v871_v33 }
 0x476   :  { %v873_v36 = vsel %vm872_vm15, %v868_v35, inf  ;;  %vm1255_vm15 = vcmask 670720  }
 0x477   :  { %874 = vmin.xlane.f32.xlu1 %v873_v36  ;;  %v878_v1 = vshll.u32 %v877_v61, 16 }
 0x478   :  { %v885_v37 = vpop.xlane.xlu0 %884 }
 0x479   :  { %vm886_vm1 = vcmp.eq.f32.partialorder %v883_v2, %v885_v37  ;;  %v891_v2 = vcvt.f32.s32 %v885_v37 }
 0x47a   :  { %v887_v40 = vsel %vm886_vm1, %v882_v38, inf }
 0x47b   :  { %888 = vmin.xlane.f32.xlu0 %v887_v40  ;;  %v892_v12 = vshll.u32 %v891_v2, 16 }
 0x488   :  { %1547 = vrot.lane.b32.xlu1 %v1943_v50, %s1578_s6 }
 0x491   :  { %1552 = vrot.lane.b32.xlu0 %v1551_v53, %s1578_s6  ;;  %s1587_s6 = smov 24  }
 0x4ff   :  { %v861_v59 = vpop.xlane.xlu0 %860 }
 0x500   :  { %v862_v62 = vcvt.f32.s32 %v861_v59  ;;  %v847_v49 = vpop.xlane.xlu1 %846 }
 0x501   :  { %v848_v56 = vcvt.f32.s32 %v847_v49 }
 0x502   :  { %v865_v63 = vadd.s32 %v864_v60, %v862_v62 }
 0x503   :  { %v851_v0 = vadd.s32 %v850_v24, %v848_v56 }
 0x504   :  { %vm896_vm2 = vcmp.lt.s32.totalorder %v865_v63, 127  ;;  %v875_v18 = vpop.xlane.xlu1 %874 }
 0x505   :  { %v897_v3 = vsel %vm896_vm2, %v865_v63, 127  ;;  %vm894_vm3 = vcmp.lt.s32.totalorder %v851_v0, 127  ;;  %v876_v4 = vcvt.f32.s32 %v875_v18 }
 0x506   :  { %vm903_vm4 = vcmp.eq.s32.totalorder %v1883_v48, %v897_v3  ;;  %v895_v5 = vsel %vm894_vm3, %v851_v0, 127 }
 0x507   :  { %v879_v6 = vadd.s32 %v878_v1, %v876_v4  ;;  %vm902_vm5 = vcmp.eq.s32.totalorder %v1883_v48, %v895_v5  ;;  %v1284_v8 = vsel %vm903_vm4, 1.0, %v1582_v7 }
 0x508   :  { %v1283_v9 = vsel %vm902_vm5, 1.0, %v1582_v7  ;;  %1421 = vmatprep.mubr.msk.f32.mxu1 %vm902_vm5, %v1583_v10  ;;  %v889_v11 = vpop.xlane.xlu0 %888  ;;  %v1548_v20 = vpop.permute.xlu1 %1547 }
 0x509   :  { %vm898_vm6 = vcmp.lt.s32.totalorder %v879_v6, 127  ;;  %v1027_v13 = vadd.f32 %v1284_v8, %v1283_v9  ;;  %v890_v14 = vcvt.f32.s32 %v889_v11  ;;  %1422 = vmatmul.mubr.msk.f32.vlgmr.msra.gmra.mrb[4].mxu1 %vm903_vm4, %v1583_v10  ;;  %v1550_v39 = vunpack.i.h.bf16 %v1548_v20 }
 0x50a   :  { %v899_v15 = vsel %vm898_vm6, %v879_v6, 127  ;;  %v1549_v22 = vunpack.i.l.bf16 %v1548_v20 }
 0x50b   :  { %v893_v16 = vadd.s32 %v892_v12, %v890_v14  ;;  %vm904_vm7 = vcmp.eq.s32.totalorder %v1883_v48, %v899_v15 }
 0x50c   :  { %v1285_v52 = vsel %vm904_vm7, 1.0, %v1582_v7  ;;  %1424 = vmatprep.mubr.msk.f32.mxu1 %vm904_vm7, %v1583_v10  ;;  %v1553_v21 = vpop.permute.xlu0 %1552  ;;  %v1490_v30 = vpack.c.bf16 %v1550_v39, %v1549_v22 }
 0x50d   :  { %vm900_vm9 = vcmp.lt.s32.totalorder %v893_v16, 127  ;;  %v1028_v58 = vadd.f32 %v1285_v52, %v1027_v13  ;;  %v1555_v28 = vunpack.i.h.bf16 %v1553_v21  ;;  %v1554_v29 = vunpack.i.l.bf16 %v1553_v21 }
 0x50e   :  { %v901_v17 = vsel %vm900_vm9, %v893_v16, 127  ;;  %1491 = vmatpush3.bf16.msra.mxu0 %v1490_v30 }
 0x50f   :  { %vm905_vm10 = vcmp.eq.s32.totalorder %v1883_v48, %v901_v17  ;;  %v1493_v31 = vpack.c.bf16 %v1555_v28, %v1554_v29  ;;  %1492 = vmatprep.subr.bf16.mxu0 %v1584_v27 }
 0x510   :  { %v1286_v19 = vsel %vm905_vm10, 1.0, %v1582_v7  ;;  %1425 = vmatmul.mubr.msk.f32.gmra.mrb[6].mxu1 %vm905_vm10, %v1583_v10 }
 0x511   :  { %v1029_v34 = vadd.f32 %v1286_v19, %v1028_v58  ;;  %1446 = vmatprep.mubr.msk.f32.mxu1 %vm1585_vm11, %v1582_v7 }
 0x512   :  { %1494 = vmatpush3.bf16.msra.mxu0 %v1493_v31 }
 0x513   :  { %v1030_v36 = vrot.slane %v1029_v34, 4 }
 0x515   :  { %v1031_v41 = vadd.f32 %v1030_v36, %v1029_v34 }
 0x517   :  { %v1032_v53 = vrot.slane %v1031_v41, 2 }
 0x519   :  { %v1033_v60 = vadd.f32 %v1032_v53, %v1031_v41 }
 0x5dc   :  { %v1423_v48 = vpop.f32.mrb[4].mxu1 }
 0x5dd   :  { %v1000_v33 = vsub.f32 %v1423_v48, %v1870_v25  ;;  %1048 = vrot.lane.b32.xlu1 %v1423_v48, %s1586_s3  ;;  %v980_v35 = vpop.f32.mrb[5].mxu1 }
 0x5de   :  { %v999_v37 = vsub.f32 %v980_v35, %v1861_v23  ;;  %v1561_v23 = vpack.i.bf16 %v1573_v47, %v1948_v51  ;;  %v1034_v51 = vrot.slane %v1033_v60, 1 }
 0x5df   :  { %v1004_v38 = vmul.f32 %v1000_v33, %v1000_v33 }
 0x5e0   :  { %v1003_v40 = vmul.f32 %v999_v37, %v999_v37  ;;  %v1035_v49 = vadd.f32 %v1034_v51, %v1033_v60 }
 0x5e1   :  { %v1008_v54 = vsel %vm718_vm8, %v1004_v38, 0.0 }
 0x5e2   :  { %v1007_v42 = vsel %vm718_vm8, %v1003_v40, 0.0  ;;  %v1037_v24 = vmul.f32 0.03125, %v1035_v49 }
 0x5e3   :  { %v1009_v43 = vadd.f32 %v1008_v54, %v1007_v42  ;;  %v1426_v45 = vpop.f32.mrb[6].mxu1 }
 0x5e4   :  { %v1002_v46 = vsub.f32 %v1426_v45, %v1876_v26  ;;  %1056 = vrot.lane.b32.xlu0 %v1426_v45, %s1587_s6  ;;  %v990_v25 = vpop.f32.mrb[7].mxu1  ;;  %v1038_v56 = vadd.f32 1e-10, %v1037_v24 }
 0x5e5   :  { %v1001_v44 = vsub.f32 %v990_v25, %v1868_v32  ;;  %1052 = vrot.lane.b32.xlu1 %v990_v25, %s1588_s26  ;;  %v1574_v32 = vld [vmem:[%s1991_s2 + $0xb] ss:$0 sm:$0xff] }
 0x5e6   :  { %v1006_v55 = vmul.f32 %v1002_v46, %v1002_v46  ;;  %1566 = vlog2.f32 %v1038_v56 }
 0x5e7   :  { %v1005_v57 = vmul.f32 %v1001_v44, %v1001_v44 }
 0x5e8   :  { %1562 = vrot.lane.b32.xlu0 %v1561_v23, %s1589_s27  ;;  %v1012_v61 = vsel %vm718_vm8, %v1006_v55, 0.0 }
 0x5e9   :  { %v1010_v26 = vsel %vm718_vm8, %v1005_v57, 0.0  ;;  %1557 = vrot.lane.b32.xlu1 %v1943_v50, %s1589_s27 }
 0x5ea   :  { %v1011_v59 = vadd.f32 %v1010_v26, %v1009_v43 }
 0x5ec   :  { %v1013_v62 = vadd.f32 %v1012_v61, %v1011_v59 }
 0x5ed   :  { %1080 = vrot.lane.b32.xlu1 %v1574_v32, %s1589_s27 }
 0x5f0   :  { %v1567_v63 = vpop.eup %1566 }
 0x5f1   :  { %v1040_v0 = vmul.f32 0.6931472, %v1567_v63 }
 0x5f3   :  { %v1041_v1 = vmul.f32 %v1040_v0, %v1037_v24 }
 0x607   :  { %1014 = vadd.xlane.f32.xlu0 %v1013_v62 }
 0x611   :  { %1042 = vadd.xlane.f32.xlu1 %v1041_v1 }
 0x64f   :  { %v1049_v50 = vpop.permute.xlu1 %1048 }
 0x650   :  { %v1059_v2 = vsel %vm718_vm8, %v980_v35, %v1049_v50  ;;  %vm1251_vm8 = vcmask 654336  }
 0x656   :  { %v1057_v18 = vpop.permute.xlu0 %1056 }
 0x657   :  { %v1053_v3 = vpop.permute.xlu1 %1052 }
 0x658   :  { %v1061_v4 = vsel %vm1060_vm12, %v1059_v2, %v1053_v3 }
 0x659   :  { %v1063_v5 = vsel %vm1062_vm13, %v1061_v4, %v1057_v18 }
 0x65a   :  { %1436 = vmatmul.mubr.msk.f32.vlgmr.msra.gmra.mrb[16].mxu0 %vm397_vm0, %v1063_v5  ;;  %v1563_v6 = vpop.permute.xlu0 %1562 }
 0x65b   :  { %v1558_v7 = vpop.permute.xlu1 %1557  ;;  %v1565_v8 = vunpack.i.h.bf16 %v1563_v6  ;;  %v1564_v9 = vunpack.i.l.bf16 %v1563_v6 }
 0x65c   :  { %v1560_v10 = vunpack.i.h.bf16 %v1558_v7  ;;  %v1559_v11 = vunpack.i.l.bf16 %v1558_v7 }
 0x65d   :  { %v1499_v13 = vpack.c.bf16 %v1565_v8, %v1564_v9 }
 0x65e   :  { %v1496_v12 = vpack.c.bf16 %v1560_v10, %v1559_v11 }
 0x65f   :  { %v1081_v34 = vpop.permute.xlu1 %1080 }
 0x660   :  { %1497 = vmatpush3.bf16.msra.mxu1 %v1496_v12 }
 0x661   :  { %1498 = vmatprep.subr.bf16.mxu1 %v1584_v27  ;;  %v1292_v27 = vld [vmem:[%s1991_s2 + $0xc] ss:$0 sm:$0xff] }
 0x664   :  { %1500 = vmatpush3.bf16.msra.mxu1 %v1499_v13 }
 0x694   :  { %v1015_v14 = vpop.xlane.xlu0 %1014 }
 0x695   :  { %v1016_v15 = vrot.slane %v1015_v14, 4 }
 0x697   :  { %v1017_v16 = vadd.f32 %v1016_v15, %v1015_v14 }
 0x699   :  { %v1018_v52 = vrot.slane %v1017_v16, 2 }
 0x69b   :  { %v1019_v58 = vadd.f32 %v1018_v52, %v1017_v16 }
 0x69d   :  { %v1020_v17 = vrot.slane %v1019_v58, 1 }
 0x69e   :  { %v1043_v31 = vpop.xlane.xlu1 %1042 }
 0x69f   :  { %v1021_v19 = vadd.f32 %v1020_v17, %v1019_v58  ;;  %v1044_v48 = vsub.f32 0.0, %v1043_v31 }
 0x6a1   :  { %1501 = vpush %v1021_v19  ;;  %v1045_v33 = vmul.f32 1.442695, %v1044_v48 }
 0x6a3   :  { %1568 = vpow2.f32 %v1045_v33 }
 0x6ad   :  { %v1569_v54 = vpop.eup %1568 }
 0x6d2   :  { %s1502_s5 = spop %1501 }
 0x6d3   :  { %v1023_v35 = vstv %s1502_s5 }
 0x6d4   :  { %v1024_v36 = vmul.f32 1.25, %v1023_v35 }
 0x6d6   :  { %v1026_v37 = vmul.f32 0.00390625, %v1024_v36 }
 0x72d   :  { %v1152_v20 = vpop.f32.mrb[16].mxu0 }
 0x72e   :  { %v1153_v21 = vadd.f32 %v1152_v20, %v1081_v34  ;;  %v1437_v39 = vpop.f32.mrb[17].mxu0 }
 0x730   :  { %v1156_v22 = vmax.f32 %v1153_v21, 0.0 }
 0x732   :  { %1447 = vmatmul.mubr.msk.f32.vlgmr.msra.gmra.mrb[8].mxu1 %vm397_vm0, %v1156_v22 }
 0x805   :  { %v1242_v28 = vpop.f32.mrb[8].mxu1 }
 0x806   :  { %v1243_v29 = vadd.f32 %v1292_v27, %v1242_v28  ;;  %v1448_v30 = vpop.f32.mrb[9].mxu1 }
 0x808   :  { %1247 = vrot.lane.b32.xlu0 %v1243_v29, %s1590_s0 }
 0x87a   :  { %v1248_v38 = vpop.permute.xlu0 %1247 }
 0x87b   :  { %v1250_v40 = vsel %vm397_vm0, %v1063_v5, %v1248_v38 }
 0x87c   :  { %v1252_v41 = vsel %vm1251_vm8, %v1250_v40, %v1026_v37 }
 0x87d   :  { %v1254_v42 = vsel %vm1253_vm14, %v1252_v41, %v1569_v54 }
 0x87e   :  { %v1256_v43 = vsel %vm1255_vm15, %v1254_v42, 0.0 }
 0x87f   :  { %1257 = vst [vmem:[%s1993_s4] sm:$0xff] %v1256_v43 }

</bundles_post_ra>
